<compile_context>
chip_gen: v6e
topology: v6e:2x2x1
jax: 0.10.0
libtpu: 0.0.40
codegen_flags: <defaults>
</compile_context>

<pallas_src>
import jax
import jax.numpy as jnp
from jax.experimental import pallas as pl
from jax.experimental.pallas import tpu as pltpu

_LANE = 128     # stored feature dims padded to this (lane-dense stores)
_K_IN = 256     # flattened-input feature dim padded to 2 full lane groups
_TM_MAX = 256   # max batch rows per grid step (multiple of 256 for v6e/v7x MXU)
_NEG = -1e30    # effectively -inf for the padded softmax logits


# ----------------------------- Pallas kernel -------------------------------

def _generator_kernel(x_ref, m1_ref, m2_ref, b2_ref,
                      w3_ref, b3_ref, w4_ref, b4_ref, o_ref):
    """Fused forward for a (TM, 256) block of flattened (bias-augmented) images.

    conv1/conv2 were lowered (in prepare_params) to matmuls against dense
    convolution matrices, so the whole network is 4 chained MXU bf16 matmuls
    with f32 accumulation.
    """
    x = x_ref[...]                                                 # (TM,256) bf16

    # Conv2d(1,10,5) + bias (folded into row 144 of m1) + ReLU -> (TM, 640)
    h = jnp.dot(x, m1_ref[...], preferred_element_type=jnp.float32)
    h = jnp.maximum(h, 0.0)

    # Conv2d(10,20,5) + ReLU -> (TM, 320) == torch.flatten (c, oh, ow) order
    h = jnp.dot(h.astype(jnp.bfloat16), m2_ref[...],
                preferred_element_type=jnp.float32) + b2_ref[...]
    h = jnp.maximum(h, 0.0)

    # Dropout2d -> identity (inference semantics).

    # Linear(320, 50) + ReLU, padded to 128 lanes (cols 50.. are exactly 0).
    h = jnp.dot(h.astype(jnp.bfloat16), w3_ref[...],
                preferred_element_type=jnp.float32) + b3_ref[...]
    h = jnp.maximum(h, 0.0)                                        # (TM,128)

    # Linear(50, 2) + Softmax(dim=1).  Padded logit columns carry a -1e30 bias
    # so exp() underflows to 0 and they never perturb the normalization.
    z = jnp.dot(h.astype(jnp.bfloat16), w4_ref[...],
                preferred_element_type=jnp.float32) + b4_ref[...]
    z = z - jnp.max(z, axis=-1, keepdims=True)
    e = jnp.exp(z)
    o_ref[...] = (e / jnp.sum(e, axis=-1, keepdims=True)).astype(o_ref.dtype)


# ------------------------- One-time parameter prep --------------------------

def _conv_as_matmul(w, b, h_in, w_in):
    """Lower Conv2d (valid, stride 1, NCHW/OIHW) to a dense matmul.

    Returns (M, B) such that for a single image x of shape (Cin, H, W):
        conv(x, w, b).flatten()  ==  x.reshape(1, Cin*H*W) @ M + B
    with output flattened in PyTorch (c, oh, ow) order.
    """
    cout, cin, k, _ = w.shape
    oh, ow = h_in - k + 1, w_in - k + 1
    w = w.astype(jnp.float32)

    ih = jnp.arange(h_in); oh_i = jnp.arange(oh)
    dh = ih[:, None] - oh_i[None, :]                      # (H, OH) = kh index
    vh = (dh >= 0) & (dh < k)
    iw = jnp.arange(w_in); ow_i = jnp.arange(ow)
    dw = iw[:, None] - ow_i[None, :]                      # (W, OW) = kw index
    vw = (dw >= 0) & (dw < k)

    wt = w[:, :, jnp.clip(dh, 0, k - 1), :]               # (Cout,Cin,H,OH,K)
    wt = wt[:, :, :, :, jnp.clip(dw, 0, k - 1)]           # (Cout,Cin,H,OH,W,OW)
    mask = vh[:, :, None, None] & vw[None, None, :, :]    # (H,OH,W,OW)
    m6 = jnp.where(mask[None, None], wt, 0.0)             # (Cout,Cin,H,OH,W,OW)
    m = m6.transpose(1, 2, 4, 0, 3, 5).reshape(cin * h_in * w_in, cout * oh * ow)
    bias = jnp.repeat(b.astype(jnp.float32), oh * ow)[None, :]   # (1, Cout*OH*OW)
    return m, bias


def prepare_params(params):
    """Hoisted (run once): lower all weights into the bf16 matmul form the
    fused kernel consumes, with lane-dense padding where results are stored."""
    m1, b1 = _conv_as_matmul(params["conv1_w"], params["conv1_b"], 12, 12)  # (144,640)
    m2, b2 = _conv_as_matmul(params["conv2_w"], params["conv2_b"], 8, 8)    # (640,320)

    # Pad conv1 matrix K: 144 -> 256 (zero rows) and fold conv1's bias into
    # row 144, matched by the constant-1 input column appended in the wrapper.
    m1p = jnp.zeros((_K_IN, m1.shape[1]), jnp.float32)
    m1p = m1p.at[:m1.shape[0]].set(m1).at[m1.shape[0]].set(b1[0])           # (256,640)

    f32 = jnp.float32
    w3 = jnp.pad(params["fc1_w"].astype(f32).T, ((0, 0), (0, _LANE - 50)))  # (320,128)
    b3 = jnp.pad(params["fc1_b"].astype(f32), (0, _LANE - 50))[None, :]     # (1,128)
    w4 = jnp.pad(params["fc2_w"].astype(f32).T,
                 ((0, _LANE - 50), (0, _LANE - 2)))                         # (128,128)
    # Padded logit columns get a -1e30 bias -> masked out of the softmax.
    b4 = jnp.pad(params["fc2_b"].astype(f32), (0, _LANE - 2),
                 constant_values=_NEG)[None, :]                             # (1,128)

    bf16 = jnp.bfloat16
    return (m1p.astype(bf16), m2.astype(bf16), b2,
            w3.astype(bf16), b3, w4.astype(bf16), b4)


# ------------------------------ Forward pass --------------------------------

@jax.jit
def generator_forward(prepped, x):
    """Forward pass matching Generator.forward (inference semantics)."""
    m1, m2, b2, w3, b3, w4, b4 = prepped
    n = x.shape[0]
    xf = x.astype(jnp.float32).reshape(n, -1)                # (N, 144), NCHW flatten
    # Pad features 144 -> 256 (aligned lane groups); column 144 is the
    # constant-1 "bias" column matching row 144 of m1.
    xf = jnp.pad(xf, ((0, 0), (0, _K_IN - xf.shape[1])))
    xf = xf.at[:, 144].set(1.0)

    # Batch tile: up to 256 rows (MXU-height on v6e/v7x), shrunk for tiny
    # batches so padded-row work stays small.  Always a multiple of 8.
    tm = min(_TM_MAX, ((n + 7) // 8) * 8)
    n_pad = ((n + tm - 1) // tm) * tm
    if n_pad != n:
        xf = jnp.pad(xf, ((0, n_pad - n), (0, 0)))
    xf = xf.astype(jnp.bfloat16)

    full = lambda i: (0, 0)   # weights: same block every step -> VMEM resident
    out = pl.pallas_call(
        _generator_kernel,
        out_shape=jax.ShapeDtypeStruct((n_pad, _LANE), jnp.float32),
        grid=(n_pad // tm,),
        in_specs=[
            pl.BlockSpec((tm, _K_IN), lambda i: (i, 0)),
            pl.BlockSpec(m1.shape, full),
            pl.BlockSpec(m2.shape, full), pl.BlockSpec(b2.shape, full),
            pl.BlockSpec(w3.shape, full), pl.BlockSpec(b3.shape, full),
            pl.BlockSpec(w4.shape, full), pl.BlockSpec(b4.shape, full),
        ],
        out_specs=pl.BlockSpec((tm, _LANE), lambda i: (i, 0)),
        compiler_params=pltpu.CompilerParams(
            dimension_semantics=("parallel",)),
    )(xf, m1, m2, b2, w3, b3, w4, b4)
    return out[:n, :2]


# ------------------------------- Reference ----------------------------------

def reference_forward(params, x):
    """Pure-JAX (XLA) reference with identical semantics, for validation."""
    dn = ("NCHW", "OIHW", "NCHW")
    h = jax.lax.conv_general_dilated(x, params["conv1_w"], (1, 1), "VALID",
                                     dimension_numbers=dn)
    h = jnp.maximum(h + params["conv1_b"][None, :, None, None], 0.0)
    h = jax.lax.conv_general_dilated(h, params["conv2_w"], (1, 1), "VALID",
                                     dimension_numbers=dn)
    h = jnp.maximum(h + params["conv2_b"][None, :, None, None], 0.0)
    h = h.reshape(x.shape[0], -1)
    h = jnp.maximum(h @ params["fc1_w"].T + params["fc1_b"], 0.0)
    z = h @ params["fc2_w"].T + params["fc2_b"]
    return jax.nn.softmax(z, axis=1)


def init_params(key):
    """Deterministic synthetic parameters with PyTorch layer shapes."""
    ks = jax.random.split(key, 8)
    s = 0.1
    return {
        "conv1_w": jax.random.normal(ks[0], (10, 1, 5, 5), jnp.float32) * s,
        "conv1_b": jax.random.normal(ks[1], (10,), jnp.float32) * s,
        "conv2_w": jax.random.normal(ks[2], (20, 10, 5, 5), jnp.float32) * s,
        "conv2_b": jax.random.normal(ks[3], (20,), jnp.float32) * s,
        "fc1_w":   jax.random.normal(ks[4], (50, 320), jnp.float32) * s,
        "fc1_b":   jax.random.normal(ks[5], (50,), jnp.float32) * s,
        "fc2_w":   jax.random.normal(ks[6], (2, 50), jnp.float32) * s,
        "fc2_b":   jax.random.normal(ks[7], (2,), jnp.float32) * s,
    }


if __name__ == "__main__":
    key = jax.random.PRNGKey(0)
    k_in, k_par = jax.random.split(key)
    # Input shape is dictated by Linear(320, 50): (N, 1, 12, 12)
    x = jax.random.normal(k_in, (2, 1, 12, 12), jnp.float32)
    params = init_params(k_par)

    prepped = prepare_params(params)     # one-time weight lowering (hoisted)
    out = generator_forward(prepped, x)
    out = jax.block_until_ready(out)

    assert out.shape == (2, 2), out.shape
    # Softmax rows sum to 1 (exact divide -> f32 precision).
    assert jnp.allclose(jnp.sum(out, axis=-1), 1.0, atol=1e-3)
    # Matches the pure-JAX f32 reference (bf16 matmuls -> slightly loose tol).
    ref = reference_forward(params, x)
    assert jnp.allclose(out, ref, atol=2e-2), (out, ref)
    print("KERNEL_OK")
</pallas_src>

<mosaic_0001>
module attributes {stable_mosaic.version = 11 : i64} {
  func.func @_generator_kernel(%arg0: i32, %arg1: memref<8x256xbf16, #tpu.memory_space<vmem>>, %arg2: memref<256x640xbf16, #tpu.memory_space<vmem>>, %arg3: memref<640x320xbf16, #tpu.memory_space<vmem>>, %arg4: memref<1x320xf32, #tpu.memory_space<vmem>>, %arg5: memref<320x128xbf16, #tpu.memory_space<vmem>>, %arg6: memref<1x128xf32, #tpu.memory_space<vmem>>, %arg7: memref<128x128xbf16, #tpu.memory_space<vmem>>, %arg8: memref<1x128xf32, #tpu.memory_space<vmem>>, %arg9: memref<8x128xf32, #tpu.memory_space<vmem>>) attributes {dimension_semantics = [#tpu.dimension_semantics<parallel>], iteration_bounds = array<i64: 1>, scalar_prefetch = 0 : i64, scratch_operands = 0 : i64, tpu.core_type = #tpu.core_type<tc>, window_params = [{transform_indices = @transform_0, window_bounds = array<i64: 8, 256>}, {pipeline_mode = #tpu.pipeline_mode<synchronous>, transform_indices = @transform_1, window_bounds = array<i64: 256, 640>}, {pipeline_mode = #tpu.pipeline_mode<synchronous>, transform_indices = @transform_2, window_bounds = array<i64: 640, 320>}, {pipeline_mode = #tpu.pipeline_mode<synchronous>, transform_indices = @transform_3, window_bounds = array<i64: 1, 320>}, {pipeline_mode = #tpu.pipeline_mode<synchronous>, transform_indices = @transform_4, window_bounds = array<i64: 320, 128>}, {pipeline_mode = #tpu.pipeline_mode<synchronous>, transform_indices = @transform_5, window_bounds = array<i64: 1, 128>}, {pipeline_mode = #tpu.pipeline_mode<synchronous>, transform_indices = @transform_6, window_bounds = array<i64: 128, 128>}, {pipeline_mode = #tpu.pipeline_mode<synchronous>, transform_indices = @transform_7, window_bounds = array<i64: 1, 128>}, {transform_indices = @transform_8, window_bounds = array<i64: 8, 128>}]} {
    %c0 = arith.constant 0 : index
    %c0_0 = arith.constant 0 : index
    %0 = vector.load %arg1[%c0, %c0_0] : memref<8x256xbf16, #tpu.memory_space<vmem>>, vector<8x256xbf16>
    %c0_1 = arith.constant 0 : index
    %c0_2 = arith.constant 0 : index
    %1 = vector.load %arg2[%c0_1, %c0_2] : memref<256x640xbf16, #tpu.memory_space<vmem>>, vector<256x640xbf16>
    %cst = arith.constant dense<0.000000e+00> : vector<8x640xf32>
    %2 = tpu.matmul %0, %1, %cst {dimension_numbers = #tpu.dot_dimension_numbers<[1], [0], [0], [1], [0, 0, 1, 1], [], []>} : vector<8x256xbf16>, vector<256x640xbf16>, vector<8x640xf32> -> vector<8x640xf32>
    %cst_3 = arith.constant 0.000000e+00 : f32
    %3 = vector.broadcast %cst_3 : f32 to vector<8x640xf32>
    %4 = arith.maximumf %2, %3 : vector<8x640xf32>
    %5 = arith.truncf %4 : vector<8x640xf32> to vector<8x640xbf16>
    %c0_4 = arith.constant 0 : index
    %c0_5 = arith.constant 0 : index
    %6 = vector.load %arg3[%c0_4, %c0_5] : memref<640x320xbf16, #tpu.memory_space<vmem>>, vector<640x320xbf16>
    %cst_6 = arith.constant dense<0.000000e+00> : vector<8x320xf32>
    %7 = tpu.matmul %5, %6, %cst_6 {dimension_numbers = #tpu.dot_dimension_numbers<[1], [0], [0], [1], [0, 0, 1, 1], [], []>} : vector<8x640xbf16>, vector<640x320xbf16>, vector<8x320xf32> -> vector<8x320xf32>
    %c0_7 = arith.constant 0 : index
    %c0_8 = arith.constant 0 : index
    %8 = vector.load %arg4[%c0_7, %c0_8] : memref<1x320xf32, #tpu.memory_space<vmem>>, vector<1x320xf32>
    %9 = vector.broadcast %8 : vector<1x320xf32> to vector<8x320xf32>
    %10 = arith.addf %7, %9 : vector<8x320xf32>
    %cst_9 = arith.constant 0.000000e+00 : f32
    %11 = vector.broadcast %cst_9 : f32 to vector<8x320xf32>
    %12 = arith.maximumf %10, %11 : vector<8x320xf32>
    %13 = arith.truncf %12 : vector<8x320xf32> to vector<8x320xbf16>
    %c0_10 = arith.constant 0 : index
    %c0_11 = arith.constant 0 : index
    %14 = vector.load %arg5[%c0_10, %c0_11] : memref<320x128xbf16, #tpu.memory_space<vmem>>, vector<320x128xbf16>
    %cst_12 = arith.constant dense<0.000000e+00> : vector<8x128xf32>
    %15 = tpu.matmul %13, %14, %cst_12 {dimension_numbers = #tpu.dot_dimension_numbers<[1], [0], [0], [1], [0, 0, 1, 1], [], []>} : vector<8x320xbf16>, vector<320x128xbf16>, vector<8x128xf32> -> vector<8x128xf32>
    %c0_13 = arith.constant 0 : index
    %c0_14 = arith.constant 0 : index
    %16 = vector.load %arg6[%c0_13, %c0_14] : memref<1x128xf32, #tpu.memory_space<vmem>>, vector<1x128xf32>
    %17 = vector.broadcast %16 : vector<1x128xf32> to vector<8x128xf32>
    %18 = arith.addf %15, %17 : vector<8x128xf32>
    %cst_15 = arith.constant 0.000000e+00 : f32
    %19 = vector.broadcast %cst_15 : f32 to vector<8x128xf32>
    %20 = arith.maximumf %18, %19 : vector<8x128xf32>
    %21 = arith.truncf %20 : vector<8x128xf32> to vector<8x128xbf16>
    %c0_16 = arith.constant 0 : index
    %c0_17 = arith.constant 0 : index
    %22 = vector.load %arg7[%c0_16, %c0_17] : memref<128x128xbf16, #tpu.memory_space<vmem>>, vector<128x128xbf16>
    %cst_18 = arith.constant dense<0.000000e+00> : vector<8x128xf32>
    %23 = tpu.matmul %21, %22, %cst_18 {dimension_numbers = #tpu.dot_dimension_numbers<[1], [0], [0], [1], [0, 0, 1, 1], [], []>} : vector<8x128xbf16>, vector<128x128xbf16>, vector<8x128xf32> -> vector<8x128xf32>
    %c0_19 = arith.constant 0 : index
    %c0_20 = arith.constant 0 : index
    %24 = vector.load %arg8[%c0_19, %c0_20] : memref<1x128xf32, #tpu.memory_space<vmem>>, vector<1x128xf32>
    %25 = vector.broadcast %24 : vector<1x128xf32> to vector<8x128xf32>
    %26 = arith.addf %23, %25 : vector<8x128xf32>
    %cst_21 = arith.constant dense<0xFF800000> : vector<8xf32>
    %27 = vector.multi_reduction <maximumf>, %26, %cst_21 [1] : vector<8x128xf32> to vector<8xf32>
    %28 = vector.shape_cast %27 : vector<8xf32> to vector<8x1xf32>
    %29 = vector.broadcast %28 : vector<8x1xf32> to vector<8x128xf32>
    %30 = arith.subf %26, %29 : vector<8x128xf32>
    %31 = math.exp %30 : vector<8x128xf32>
    %cst_22 = arith.constant dense<0.000000e+00> : vector<8xf32>
    %32 = vector.multi_reduction <add>, %31, %cst_22 [1] : vector<8x128xf32> to vector<8xf32>
    %33 = vector.shape_cast %32 : vector<8xf32> to vector<8x1xf32>
    %34 = vector.broadcast %33 : vector<8x1xf32> to vector<8x128xf32>
    %35 = arith.divf %31, %34 : vector<8x128xf32>
    %c0_23 = arith.constant 0 : index
    %c0_24 = arith.constant 0 : index
    %36 = vector.load %arg9[%c0_23, %c0_24] : memref<8x128xf32, #tpu.memory_space<vmem>>, vector<8x128xf32>
    tpu.vector_store %arg9[%c0_23, %c0_24], %35 {strides = array<i32>} : memref<8x128xf32, #tpu.memory_space<vmem>>, vector<8x128xf32>,
    return
  }
  func.func @transform_0(%arg0: i32) -> (i32, i32) {
    %c0_i32 = arith.constant 0 : i32
    %c0_i32_0 = arith.constant 0 : i32
    return %arg0, %c0_i32 : i32, i32
  }
  func.func @transform_1(%arg0: i32) -> (i32, i32) {
    %c0_i32 = arith.constant 0 : i32
    %c0_i32_0 = arith.constant 0 : i32
    %c0_i32_1 = arith.constant 0 : i32
    return %c0_i32, %c0_i32_0 : i32, i32
  }
  func.func @transform_2(%arg0: i32) -> (i32, i32) {
    %c0_i32 = arith.constant 0 : i32
    %c0_i32_0 = arith.constant 0 : i32
    %c0_i32_1 = arith.constant 0 : i32
    return %c0_i32, %c0_i32_0 : i32, i32
  }
  func.func @transform_3(%arg0: i32) -> (i32, i32) {
    %c0_i32 = arith.constant 0 : i32
    %c0_i32_0 = arith.constant 0 : i32
    %c0_i32_1 = arith.constant 0 : i32
    return %c0_i32, %c0_i32_0 : i32, i32
  }
  func.func @transform_4(%arg0: i32) -> (i32, i32) {
    %c0_i32 = arith.constant 0 : i32
    %c0_i32_0 = arith.constant 0 : i32
    %c0_i32_1 = arith.constant 0 : i32
    return %c0_i32, %c0_i32_0 : i32, i32
  }
  func.func @transform_5(%arg0: i32) -> (i32, i32) {
    %c0_i32 = arith.constant 0 : i32
    %c0_i32_0 = arith.constant 0 : i32
    %c0_i32_1 = arith.constant 0 : i32
    return %c0_i32, %c0_i32_0 : i32, i32
  }
  func.func @transform_6(%arg0: i32) -> (i32, i32) {
    %c0_i32 = arith.constant 0 : i32
    %c0_i32_0 = arith.constant 0 : i32
    %c0_i32_1 = arith.constant 0 : i32
    return %c0_i32, %c0_i32_0 : i32, i32
  }
  func.func @transform_7(%arg0: i32) -> (i32, i32) {
    %c0_i32 = arith.constant 0 : i32
    %c0_i32_0 = arith.constant 0 : i32
    %c0_i32_1 = arith.constant 0 : i32
    return %c0_i32, %c0_i32_0 : i32, i32
  }
  func.func @transform_8(%arg0: i32) -> (i32, i32) {
    %c0_i32 = arith.constant 0 : i32
    %c0_i32_0 = arith.constant 0 : i32
    return %arg0, %c0_i32 : i32, i32
  }
}

</mosaic_0001>

<bundles_post_ra>
// kernel: generator_forward.1
= control target key start
LH: loop header
LB: loop body
LE: loop exit
PB: predicated region body
PF: predicated region fallthrough
CT: control target
= control target key end

     0   :  { %vm2833_vm0 = vmmov 0   ;;  %vm1915_vm1 = vcmask 523264   ;;  %s3621_s1 = inlined_call_operand.vmem [shape: bf16[256,640], index: 1, kind: input, shape index: {}]   ;;  %s3622_s0 = inlined_call_operand.vmem [shape: bf16[8,256], index: 0, kind: input, shape index: {}]   ;;  %s3623_s2 = inlined_call_operand.vmem [shape: bf16[640,320], index: 2, kind: input, shape index: {}]   ;;  %s3624_s4 = inlined_call_operand.vmem [shape: bf16[320,128], index: 4, kind: input, shape index: {}]   ;;  %s3625_s3 = inlined_call_operand.vmem [shape: f32[1,320], index: 3, kind: input, shape index: {}]   ;;  %s3626_s6 = inlined_call_operand.vmem [shape: bf16[128,128], index: 6, kind: input, shape index: {}]   ;;  %s3627_s5 = inlined_call_operand.vmem [shape: f32[1,128], index: 5, kind: input, shape index: {}]   ;;  %s3628_s7 = inlined_call_operand.vmem [shape: f32[1,128], index: 7, kind: input, shape index: {}]   ;;  %s3629_s8 = inlined_call_operand.vmem [shape: f32[8,128], index: 8, kind: output, shape index: {}]  }
   0x1   :  { %v2525_v0 = vld [vmem:[%s3621_s1 + $0x11c] ss:$20 sps:$4 sm:$0xff]   ;;  %v2527_v1 = vld [vmem:[%s3621_s1 + $0x124] ss:$20 sps:$4 sm:$0xff]   ;;  %v2530_v3 = vld [vmem:[%s3621_s1 + $0x120] ss:$20 sps:$4 sm:$0xff]  }
   0x2   :  { %550 = vmatprep.subr.bf16.mxu0 %v2525_v0  ;;  %v2529_v2 = vld [vmem:[%s3621_s1 + $0x118] ss:$20 sps:$4 sm:$0xff]   ;;  %591 = vmatprep.subr.bf16.mxu1 %v2527_v1  ;;  %v2531_v4 = vld [vmem:[%s3621_s1 + $0xf4] ss:$20 sps:$4 sm:$0xff]   ;;  %v2533_v5 = vld [vmem:[%s3621_s1 + $0xfc] ss:$20 sps:$4 sm:$0xff]  }
   0x3   :  { %551 = vmatpush1.bf16.msra.mxu0 %v2529_v2  ;;  %592 = vmatpush1.bf16.msra.mxu1 %v2530_v3  ;;  %v2535_v6 = vld [vmem:[%s3621_s1 + $0xf0] ss:$20 sps:$4 sm:$0xff]   ;;  %v2536_v7 = vld [vmem:[%s3621_s1 + $0xf8] ss:$20 sps:$4 sm:$0xff]   ;;  %v2539_v9 = vld [vmem:[%s3621_s1 + $0xd4] ss:$20 sps:$4 sm:$0xff]  }
   0x4   :  { %552 = vmatprep.subr.bf16.mxu0 %v2531_v4  ;;  %593 = vmatprep.subr.bf16.mxu1 %v2533_v5  ;;  %v2537_v8 = vld [vmem:[%s3621_s1 + $0xcc] ss:$20 sps:$4 sm:$0xff]   ;;  %v2541_v10 = vld [vmem:[%s3621_s1 + $0xc8] ss:$20 sps:$4 sm:$0xff]   ;;  %v2542_v11 = vld [vmem:[%s3621_s1 + $0xd0] ss:$20 sps:$4 sm:$0xff]  }
   0x5   :  { %v2543_v12 = vld [vmem:[%s3621_s1 + $0xa4] ss:$20 sps:$4 sm:$0xff]   ;;  %v2545_v13 = vld [vmem:[%s3621_s1 + $0xac] ss:$20 sps:$4 sm:$0xff]   ;;  %v2548_v15 = vld [vmem:[%s3621_s1 + $0xa8] ss:$20 sps:$4 sm:$0xff]  }
   0x6   :  { %v2547_v14 = vld [vmem:[%s3621_s1 + $0xa0] ss:$20 sps:$4 sm:$0xff]   ;;  %v2549_v16 = vld [vmem:[%s3621_s1 + $0x7c] ss:$20 sps:$4 sm:$0xff]   ;;  %v2551_v17 = vld [vmem:[%s3621_s1 + $0x84] ss:$20 sps:$4 sm:$0xff]  }
   0x7   :  { %553 = vmatpush1.bf16.msra.mxu0 %v2535_v6  ;;  %594 = vmatpush1.bf16.msra.mxu1 %v2536_v7  ;;  %v2553_v18 = vld [vmem:[%s3621_s1 + $0x78] ss:$20 sps:$4 sm:$0xff]   ;;  %v2554_v19 = vld [vmem:[%s3621_s1 + $0x80] ss:$20 sps:$4 sm:$0xff]   ;;  %v2557_v21 = vld [vmem:[%s3621_s1 + $0x5c] ss:$20 sps:$4 sm:$0xff]  }
   0x8   :  { %554 = vmatprep.subr.bf16.mxu0 %v2537_v8  ;;  %595 = vmatprep.subr.bf16.mxu1 %v2539_v9  ;;  %v2555_v20 = vld [vmem:[%s3621_s1 + $0x54] ss:$20 sps:$4 sm:$0xff]   ;;  %v2559_v22 = vld [vmem:[%s3621_s1 + $0x50] ss:$20 sps:$4 sm:$0xff]   ;;  %v2560_v23 = vld [vmem:[%s3621_s1 + $0x58] ss:$20 sps:$4 sm:$0xff]  }
   0x9   :  { %v2561_v24 = vld [vmem:[%s3621_s1 + $0x2c] ss:$20 sps:$4 sm:$0xff]   ;;  %v2563_v25 = vld [vmem:[%s3621_s1 + $0x34] ss:$20 sps:$4 sm:$0xff]   ;;  %v2566_v27 = vld [vmem:[%s3621_s1 + $0x30] ss:$20 sps:$4 sm:$0xff]  }
   0xa   :  { %v2565_v26 = vld [vmem:[%s3621_s1 + $0x28] ss:$20 sps:$4 sm:$0xff]   ;;  %v2567_v28 = vld [vmem:[%s3621_s1 + $0x4] ss:$20 sps:$4 sm:$0xff]   ;;  %v2569_v29 = vld [vmem:[%s3621_s1 + $0xc] ss:$20 sps:$4 sm:$0xff]  }
   0xb   :  { %555 = vmatpush1.bf16.msra.mxu0 %v2541_v10  ;;  %596 = vmatpush1.bf16.msra.mxu1 %v2542_v11  ;;  %v2571_v30 = vld [vmem:[%s3621_s1] ss:$20 sps:$4 sm:$0xff]   ;;  %v2572_v31 = vld [vmem:[%s3621_s1 + $0x8] ss:$20 sps:$4 sm:$0xff]   ;;  %v2575_v33 = vld [vmem:[%s3621_s1 + $0x264] ss:$20 sps:$4 sm:$0xff]  }
   0xc   :  { %556 = vmatprep.subr.bf16.mxu0 %v2543_v12  ;;  %597 = vmatprep.subr.bf16.mxu1 %v2545_v13  ;;  %v2573_v32 = vld [vmem:[%s3621_s1 + $0x25c] ss:$20 sps:$4 sm:$0xff]   ;;  %v2577_v34 = vld [vmem:[%s3621_s1 + $0x258] ss:$20 sps:$4 sm:$0xff]   ;;  %v2578_v35 = vld [vmem:[%s3621_s1 + $0x260] ss:$20 sps:$4 sm:$0xff]  }
   0xd   :  { %v2579_v36 = vld [vmem:[%s3621_s1 + $0x234] ss:$20 sps:$4 sm:$0xff]   ;;  %v2581_v37 = vld [vmem:[%s3621_s1 + $0x23c] ss:$20 sps:$4 sm:$0xff]   ;;  %v2584_v39 = vld [vmem:[%s3621_s1 + $0x238] ss:$20 sps:$4 sm:$0xff]  }
   0xe   :  { %v2583_v38 = vld [vmem:[%s3621_s1 + $0x230] ss:$20 sps:$4 sm:$0xff]   ;;  %v2585_v40 = vld [vmem:[%s3621_s1 + $0x20c] ss:$20 sps:$4 sm:$0xff]   ;;  %v2587_v41 = vld [vmem:[%s3621_s1 + $0x214] ss:$20 sps:$4 sm:$0xff]  }
   0xf   :  { %557 = vmatpush1.bf16.msra.mxu0 %v2547_v14  ;;  %598 = vmatpush1.bf16.msra.mxu1 %v2548_v15  ;;  %v2589_v42 = vld [vmem:[%s3621_s1 + $0x208] ss:$20 sps:$4 sm:$0xff]   ;;  %v2590_v43 = vld [vmem:[%s3621_s1 + $0x210] ss:$20 sps:$4 sm:$0xff]   ;;  %v2593_v45 = vld [vmem:[%s3621_s1 + $0x1ec] ss:$20 sps:$4 sm:$0xff]  }
  0x10   :  { %558 = vmatprep.subr.bf16.mxu0 %v2549_v16  ;;  %599 = vmatprep.subr.bf16.mxu1 %v2551_v17  ;;  %v2591_v44 = vld [vmem:[%s3621_s1 + $0x1e4] ss:$20 sps:$4 sm:$0xff]   ;;  %v2595_v46 = vld [vmem:[%s3621_s1 + $0x1e0] ss:$20 sps:$4 sm:$0xff]   ;;  %v2596_v48 = vld [vmem:[%s3621_s1 + $0x1e8] ss:$20 sps:$4 sm:$0xff]  }
  0x11   :  { %v30_v47 = vld [vmem:[%s3622_s0] sm:$0xff]  ;;  %v2597_v50 = vld [vmem:[%s3621_s1 + $0x1bc] ss:$20 sps:$4 sm:$0xff]   ;;  %v2601_v52 = vld [vmem:[%s3621_s1 + $0x1b8] ss:$20 sps:$4 sm:$0xff]  }
  0x12   :  { %v2127_v49 = vcombine.high %v30_v47, %v30_v47  ;;  %v2599_v51 = vld [vmem:[%s3621_s1 + $0x1c4] ss:$20 sps:$4 sm:$0xff]   ;;  %v2602_v53 = vld [vmem:[%s3621_s1 + $0x1c0] ss:$20 sps:$4 sm:$0xff]   ;;  %v2605_v55 = vld [vmem:[%s3621_s1 + $0x19c] ss:$20 sps:$4 sm:$0xff]   ;;  %v3080_v4 = vcombine.low %v30_v47, %v30_v47 }
  0x13   :  { %559 = vmatpush1.bf16.msra.mxu0 %v2553_v18  ;;  %600 = vmatpush1.bf16.msra.mxu1 %v2554_v19  ;;  %v2603_v54 = vld [vmem:[%s3621_s1 + $0x194] ss:$20 sps:$4 sm:$0xff]   ;;  %v2607_v56 = vld [vmem:[%s3621_s1 + $0x190] ss:$20 sps:$4 sm:$0xff]   ;;  %v2608_v57 = vld [vmem:[%s3621_s1 + $0x198] ss:$20 sps:$4 sm:$0xff]  }
  0x14   :  { %560 = vmatprep.subr.bf16.mxu0 %v2555_v20  ;;  %601 = vmatprep.subr.bf16.mxu1 %v2557_v21  ;;  %v2609_v58 = vld [vmem:[%s3621_s1 + $0x16c] ss:$20 sps:$4 sm:$0xff]   ;;  %v2611_v59 = vld [vmem:[%s3621_s1 + $0x174] ss:$20 sps:$4 sm:$0xff]   ;;  %v2614_v61 = vld [vmem:[%s3621_s1 + $0x170] ss:$20 sps:$4 sm:$0xff]  }
  0x15   :  { %582 = vmatprep.mubr.bf16.mxu0 %v2127_v49  ;;  %623 = vmatprep.mubr.bf16.mxu1 %v2127_v49  ;;  %v2613_v60 = vld [vmem:[%s3621_s1 + $0x168] ss:$20 sps:$4 sm:$0xff]   ;;  %v2615_v62 = vld [vmem:[%s3621_s1 + $0x144] ss:$20 sps:$4 sm:$0xff]   ;;  %v2617_v63 = vld [vmem:[%s3621_s1 + $0x14c] ss:$20 sps:$4 sm:$0xff]  }
  0x16   :  { %v2619_v0 = vld [vmem:[%s3621_s1 + $0x140] ss:$20 sps:$4 sm:$0xff]   ;;  %v2620_v1 = vld [vmem:[%s3621_s1 + $0x148] ss:$20 sps:$4 sm:$0xff]   ;;  %v2644_v3 = vld [vmem:[%s3623_s2 + $0xac] ss:$12 sps:$4 sm:$0xff]  }
  0x17   :  { %561 = vmatpush1.bf16.msra.mxu0 %v2559_v22  ;;  %602 = vmatpush1.bf16.msra.mxu1 %v2560_v23  ;;  %v2623_v2 = vld [vmem:[%s3621_s1 + $0x268] ss:$20 sps:$4 sm:$0xff]   ;;  %v2625_v6 = vld [vmem:[%s3621_s1 + $0x240] ss:$20 sps:$4 sm:$0xff]   ;;  %v2627_v10 = vld [vmem:[%s3621_s1 + $0x218] ss:$20 sps:$4 sm:$0xff]  }
  0x18   :  { %562 = vmatprep.subr.bf16.mxu0 %v2561_v24  ;;  %603 = vmatprep.subr.bf16.mxu1 %v2563_v25  ;;  %v2624_v5 = vld [vmem:[%s3621_s1 + $0x128] ss:$20 sps:$4 sm:$0xff]   ;;  %v2650_v8 = vld [vmem:[%s3623_s2 + $0x94] ss:$12 sps:$4 sm:$0xff]   ;;  %v2628_v13 = vld [vmem:[%s3621_s1 + $0xd8] ss:$20 sps:$4 sm:$0xff]  }
  0x19   :  { %v2642_v7 = vld [vmem:[%s3623_s2 + $0xa8] ss:$12 sps:$4 sm:$0xff]   ;;  %v2648_v11 = vld [vmem:[%s3623_s2 + $0x90] ss:$12 sps:$4 sm:$0xff]   ;;  %v2654_v15 = vld [vmem:[%s3623_s2 + $0x78] ss:$12 sps:$4 sm:$0xff]  }
  0x1a   :  { %v2626_v9 = vld [vmem:[%s3621_s1 + $0x100] ss:$20 sps:$4 sm:$0xff]   ;;  %v2656_v12 = vld [vmem:[%s3623_s2 + $0x7c] ss:$12 sps:$4 sm:$0xff]   ;;  %v2629_v14 = vld [vmem:[%s3621_s1 + $0x1f0] ss:$20 sps:$4 sm:$0xff]  }
  0x1b   :  { %563 = vmatpush1.bf16.msra.mxu0 %v2565_v26  ;;  %604 = vmatpush1.bf16.msra.mxu1 %v2566_v27  ;;  %v2662_v16 = vld [vmem:[%s3623_s2 + $0x64] ss:$12 sps:$4 sm:$0xff]   ;;  %v2631_v18 = vld [vmem:[%s3621_s1 + $0x1c8] ss:$20 sps:$4 sm:$0xff]   ;;  %v2660_v19 = vld [vmem:[%s3623_s2 + $0x60] ss:$12 sps:$4 sm:$0xff]  }
  0x1c   :  { %564 = vmatprep.subr.bf16.mxu0 %v2567_v28  ;;  %605 = vmatprep.subr.bf16.mxu1 %v2569_v29  ;;  %v2630_v17 = vld [vmem:[%s3621_s1 + $0xb0] ss:$20 sps:$4 sm:$0xff]   ;;  %v2668_v20 = vld [vmem:[%s3623_s2 + $0x4c] ss:$12 sps:$4 sm:$0xff]   ;;  %v2632_v21 = vld [vmem:[%s3621_s1 + $0x88] ss:$20 sps:$4 sm:$0xff]  }
  0x1d   :  { %v2633_v22 = vld [vmem:[%s3621_s1 + $0x1a0] ss:$20 sps:$4 sm:$0xff]   ;;  %v2635_v26 = vld [vmem:[%s3621_s1 + $0x178] ss:$20 sps:$4 sm:$0xff]   ;;  %v2672_v27 = vld [vmem:[%s3623_s2 + $0x30] ss:$12 sps:$4 sm:$0xff]  }
  0x1e   :  { %v2666_v23 = vld [vmem:[%s3623_s2 + $0x48] ss:$12 sps:$4 sm:$0xff]   ;;  %v2636_v29 = vld [vmem:[%s3621_s1 + $0x38] ss:$20 sps:$4 sm:$0xff]  }
  0x1f   :  { %565 = vmatpush1.bf16.msra.mxu0 %v2571_v30  ;;  %606 = vmatpush1.bf16.msra.mxu1 %v2572_v31  ;;  %v2674_v24 = vld [vmem:[%s3623_s2 + $0x34] ss:$12 sps:$4 sm:$0xff]   ;;  %v2680_v28 = vld [vmem:[%s3623_s2 + $0x1c] ss:$12 sps:$4 sm:$0xff]   ;;  %v2637_v30 = vld [vmem:[%s3621_s1 + $0x150] ss:$20 sps:$4 sm:$0xff]  }
  0x20   :  { %566 = vmatprep.subr.bf16.mxu0 %v2573_v32  ;;  %607 = vmatprep.subr.bf16.mxu1 %v2575_v33  ;;  %v2634_v25 = vld [vmem:[%s3621_s1 + $0x60] ss:$20 sps:$4 sm:$0xff]   ;;  %v2678_v31 = vld [vmem:[%s3623_s2 + $0x18] ss:$12 sps:$4 sm:$0xff]  }
  0x21   :  { %v2686_v32 = vld [vmem:[%s3623_s2 + $0x4] ss:$12 sps:$4 sm:$0xff]  }
  0x22   :  { %v2638_v33 = vld [vmem:[%s3621_s1 + $0x10] ss:$20 sps:$4 sm:$0xff]  }
  0x23   :  { %567 = vmatpush2.bf16.msra.mxu0 %v2577_v34  ;;  %608 = vmatpush2.bf16.msra.mxu1 %v2578_v35  ;;  %v2641_v34 = vld [vmem:[%s3623_s2 + $0x22c] ss:$12 sps:$4 sm:$0xff]  }
  0x24   :  { %568 = vmatprep.subr.bf16.mxu0 %v2579_v36  ;;  %609 = vmatprep.subr.bf16.mxu1 %v2581_v37  ;;  %v2684_v35 = vld [vmem:[%s3623_s2] ss:$12 sps:$4 sm:$0xff]   ;;  %v2639_v37 = vld [vmem:[%s3623_s2 + $0x228] ss:$12 sps:$4 sm:$0xff]   ;;  %v2702_v47 = vld [vmem:[%s3623_s2 + $0x138] ss:$12 sps:$4 sm:$0xff]  }
  0x25   :  { %v2692_v36 = vld [vmem:[%s3623_s2 + $0x16c] ss:$12 sps:$4 sm:$0xff]  }
  0x27   :  { %569 = vmatpush2.bf16.msra.mxu0 %v2583_v38  ;;  %610 = vmatpush2.bf16.msra.mxu1 %v2584_v39  ;;  %v2647_v38 = vld [vmem:[%s3623_s2 + $0x214] ss:$12 sps:$4 sm:$0xff]  }
  0x28   :  { %570 = vmatprep.subr.bf16.mxu0 %v2585_v40  ;;  %611 = vmatprep.subr.bf16.mxu1 %v2587_v41  ;;  %v2690_v39 = vld [vmem:[%s3623_s2 + $0x168] ss:$12 sps:$4 sm:$0xff]   ;;  %v2645_v41 = vld [vmem:[%s3623_s2 + $0x210] ss:$12 sps:$4 sm:$0xff]  }
  0x29   :  { %v2698_v40 = vld [vmem:[%s3623_s2 + $0x154] ss:$12 sps:$4 sm:$0xff]  }
  0x2b   :  { %571 = vmatpush2.bf16.msra.mxu0 %v2589_v42  ;;  %612 = vmatpush2.bf16.msra.mxu1 %v2590_v43  ;;  %v2653_v42 = vld [vmem:[%s3623_s2 + $0x1fc] ss:$12 sps:$4 sm:$0xff]  }
  0x2c   :  { %572 = vmatprep.subr.bf16.mxu0 %v2591_v44  ;;  %613 = vmatprep.subr.bf16.mxu1 %v2593_v45  ;;  %v2696_v43 = vld [vmem:[%s3623_s2 + $0x150] ss:$12 sps:$4 sm:$0xff]   ;;  %v2651_v45 = vld [vmem:[%s3623_s2 + $0x1f8] ss:$12 sps:$4 sm:$0xff]  }
  0x2d   :  { %v2704_v44 = vld [vmem:[%s3623_s2 + $0x13c] ss:$12 sps:$4 sm:$0xff]  }
  0x2f   :  { %573 = vmatpush2.bf16.msra.mxu0 %v2595_v46  ;;  %614 = vmatpush2.bf16.msra.mxu1 %v2596_v48  ;;  %v2659_v46 = vld [vmem:[%s3623_s2 + $0x1e4] ss:$12 sps:$4 sm:$0xff]  }
  0x30   :  { %574 = vmatprep.subr.bf16.mxu0 %v2597_v50  ;;  %615 = vmatprep.subr.bf16.mxu1 %v2599_v51  ;;  %v2710_v48 = vld [vmem:[%s3623_s2 + $0x124] ss:$12 sps:$4 sm:$0xff]   ;;  %v2665_v50 = vld [vmem:[%s3623_s2 + $0x1cc] ss:$12 sps:$4 sm:$0xff]  }
  0x31   :  { %v2708_v51 = vld [vmem:[%s3623_s2 + $0x120] ss:$12 sps:$4 sm:$0xff]  }
  0x33   :  { %575 = vmatpush2.bf16.msra.mxu0 %v2601_v52  ;;  %616 = vmatpush2.bf16.msra.mxu1 %v2602_v53  ;;  %v2716_v52 = vld [vmem:[%s3623_s2 + $0x10c] ss:$12 sps:$4 sm:$0xff]   ;;  %v2663_v53 = vld [vmem:[%s3623_s2 + $0x1c8] ss:$12 sps:$4 sm:$0xff]  }
  0x34   :  { %576 = vmatprep.subr.bf16.mxu0 %v2603_v54  ;;  %617 = vmatprep.subr.bf16.mxu1 %v2605_v55  ;;  %v2671_v54 = vld [vmem:[%s3623_s2 + $0x1b4] ss:$12 sps:$4 sm:$0xff]  }
  0x35   :  { %v2714_v55 = vld [vmem:[%s3623_s2 + $0x108] ss:$12 sps:$4 sm:$0xff]  }
  0x37   :  { %577 = vmatpush2.bf16.msra.mxu0 %v2607_v56  ;;  %618 = vmatpush2.bf16.msra.mxu1 %v2608_v57  ;;  %v2722_v56 = vld [vmem:[%s3623_s2 + $0xf4] ss:$12 sps:$4 sm:$0xff]   ;;  %v2669_v57 = vld [vmem:[%s3623_s2 + $0x1b0] ss:$12 sps:$4 sm:$0xff]  }
  0x38   :  { %578 = vmatprep.subr.bf16.mxu0 %v2609_v58  ;;  %619 = vmatprep.subr.bf16.mxu1 %v2611_v59  ;;  %v2677_v58 = vld [vmem:[%s3623_s2 + $0x19c] ss:$12 sps:$4 sm:$0xff]  }
  0x39   :  { %v2720_v59 = vld [vmem:[%s3623_s2 + $0xf0] ss:$12 sps:$4 sm:$0xff]  }
  0x3b   :  { %579 = vmatpush2.bf16.msra.mxu0 %v2613_v60  ;;  %620 = vmatpush2.bf16.msra.mxu1 %v2614_v61  ;;  %v2675_v60 = vld [vmem:[%s3623_s2 + $0x198] ss:$12 sps:$4 sm:$0xff]  }
  0x3c   :  { %580 = vmatprep.subr.bf16.mxu0 %v2615_v62  ;;  %621 = vmatprep.subr.bf16.mxu1 %v2617_v63  ;;  %v2683_v61 = vld [vmem:[%s3623_s2 + $0x184] ss:$12 sps:$4 sm:$0xff]   ;;  %v2681_v62 = vld [vmem:[%s3623_s2 + $0x180] ss:$12 sps:$4 sm:$0xff]  }
  0x3d   :  { %v2689_v63 = vld [vmem:[%s3623_s2 + $0x2ec] ss:$12 sps:$4 sm:$0xff]  }
  0x3f   :  { %581 = vmatpush2.bf16.msra.mxu0 %v2619_v0  ;;  %622 = vmatpush2.bf16.msra.mxu1 %v2620_v1  ;;  %v2687_v0 = vld [vmem:[%s3623_s2 + $0x2e8] ss:$12 sps:$4 sm:$0xff]  }
  0x40   :  { %2359 = vmatprep.subr.bf16.mxu0 %v2623_v2  ;;  %1499 = vmatprep.subr.bf16.mxu1 %v2644_v3  ;;  %v2695_v1 = vld [vmem:[%s3623_s2 + $0x2d4] ss:$12 sps:$4 sm:$0xff]   ;;  %v2728_v2 = vld [vmem:[%s3623_s2 + $0xdc] ss:$12 sps:$4 sm:$0xff]   ;;  %v2726_v3 = vld [vmem:[%s3623_s2 + $0xd8] ss:$12 sps:$4 sm:$0xff]  }
  0x42   :  { %583 = vmatmul.mubr.bf16.vlgmr.msra.gmra.mxu0 %v3080_v4  ;;  %624 = vmatmul.mubr.bf16.vlgmr.msra.gmra.mxu1 %v3080_v4 }
  0x43   :  { %2360 = vmatpush3.bf16.msra.mxu0 %v2624_v5  ;;  %664 = vmatprep.mubr.bf16.mxu0 %v2127_v49  ;;  %v2657_v49 = vld [vmem:[%s3623_s2 + $0x1e0] ss:$12 sps:$4 sm:$0xff]   ;;  %v2701_v5 = vld [vmem:[%s3623_s2 + $0x2bc] ss:$12 sps:$4 sm:$0xff]  }
  0x44   :  { %2361 = vmatprep.subr.bf16.mxu0 %v2625_v6  ;;  %1500 = vmatpush1.bf16.msra.mxu1 %v2642_v7  ;;  %v2734_v6 = vld [vmem:[%s3623_s2 + $0xc4] ss:$12 sps:$4 sm:$0xff]   ;;  %v2732_v7 = vld [vmem:[%s3623_s2 + $0xc0] ss:$12 sps:$4 sm:$0xff]  }
  0x45   :  { %1501 = vmatprep.subr.bf16.mxu1 %v2650_v8  ;;  %v2699_v8 = vld [vmem:[%s3623_s2 + $0x2b8] ss:$12 sps:$4 sm:$0xff]  }
  0x47   :  { %2362 = vmatpush3.bf16.msra.mxu0 %v2626_v9  ;;  %v2707_v9 = vld [vmem:[%s3623_s2 + $0x2a4] ss:$12 sps:$4 sm:$0xff]  }
  0x48   :  { %2363 = vmatprep.subr.bf16.mxu0 %v2627_v10  ;;  %1502 = vmatpush1.bf16.msra.mxu1 %v2648_v11  ;;  %v2738_v10 = vld [vmem:[%s3623_s2 + $0x3ac] ss:$12 sps:$4 sm:$0xff]  }
  0x49   :  { %1503 = vmatprep.subr.bf16.mxu1 %v2656_v12  ;;  %v2705_v11 = vld [vmem:[%s3623_s2 + $0x2a0] ss:$12 sps:$4 sm:$0xff]  }
  0x4a   :  { %v2713_v12 = vld [vmem:[%s3623_s2 + $0x28c] ss:$12 sps:$4 sm:$0xff]  }
  0x4b   :  { %2364 = vmatpush3.bf16.msra.mxu0 %v2628_v13  ;;  %v2711_v13 = vld [vmem:[%s3623_s2 + $0x288] ss:$12 sps:$4 sm:$0xff]  }
  0x4c   :  { %2365 = vmatprep.subr.bf16.mxu0 %v2629_v14  ;;  %1504 = vmatpush1.bf16.msra.mxu1 %v2654_v15  ;;  %v2719_v14 = vld [vmem:[%s3623_s2 + $0x274] ss:$12 sps:$4 sm:$0xff]   ;;  %v2717_v15 = vld [vmem:[%s3623_s2 + $0x270] ss:$12 sps:$4 sm:$0xff]  }
  0x4d   :  { %1505 = vmatprep.subr.bf16.mxu1 %v2662_v16  ;;  %v2725_v16 = vld [vmem:[%s3623_s2 + $0x25c] ss:$12 sps:$4 sm:$0xff]  }
  0x4f   :  { %2366 = vmatpush3.bf16.msra.mxu0 %v2630_v17  ;;  %v2723_v17 = vld [vmem:[%s3623_s2 + $0x258] ss:$12 sps:$4 sm:$0xff]  }
  0x50   :  { %2367 = vmatprep.subr.bf16.mxu0 %v2631_v18  ;;  %1506 = vmatpush1.bf16.msra.mxu1 %v2660_v19  ;;  %v2731_v18 = vld [vmem:[%s3623_s2 + $0x244] ss:$12 sps:$4 sm:$0xff]   ;;  %v2729_v19 = vld [vmem:[%s3623_s2 + $0x240] ss:$12 sps:$4 sm:$0xff]  }
  0x51   :  { %1507 = vmatprep.subr.bf16.mxu1 %v2668_v20  ;;  %v2735_v20 = vld [vmem:[%s3623_s2 + $0x170] ss:$12 sps:$4 sm:$0xff]  }
  0x53   :  { %2368 = vmatpush3.bf16.msra.mxu0 %v2632_v21 }
  0x54   :  { %2369 = vmatprep.subr.bf16.mxu0 %v2633_v22  ;;  %1508 = vmatpush1.bf16.msra.mxu1 %v2666_v23 }
  0x55   :  { %1509 = vmatprep.subr.bf16.mxu1 %v2674_v24 }
  0x57   :  { %2370 = vmatpush3.bf16.msra.mxu0 %v2634_v25 }
  0x58   :  { %2371 = vmatprep.subr.bf16.mxu0 %v2635_v26  ;;  %1510 = vmatpush1.bf16.msra.mxu1 %v2672_v27 }
  0x59   :  { %1511 = vmatprep.subr.bf16.mxu1 %v2680_v28 }
  0x5b   :  { %2372 = vmatpush3.bf16.msra.mxu0 %v2636_v29 }
  0x5c   :  { %2373 = vmatprep.subr.bf16.mxu0 %v2637_v30  ;;  %1512 = vmatpush1.bf16.msra.mxu1 %v2678_v31 }
  0x5d   :  { %1513 = vmatprep.subr.bf16.mxu1 %v2686_v32 }
  0x5f   :  { %2374 = vmatpush3.bf16.msra.mxu0 %v2638_v33 }
  0x60   :  { %1540 = vmatprep.subr.bf16.mxu0 %v2641_v34  ;;  %1514 = vmatpush1.bf16.msra.mxu1 %v2684_v35  ;;  %v2736_v34 = vld [vmem:[%s3623_s2 + $0x3a8] ss:$12 sps:$4 sm:$0xff]   ;;  %v2739_v35 = vld [vmem:[%s3623_s2 + $0xb0] ss:$12 sps:$4 sm:$0xff]  }
  0x61   :  { %1515 = vmatprep.subr.bf16.mxu1 %v2692_v36 }
  0x62   :  { %665 = vmatmul.mubr.bf16.vlgmr.msra.gmra.mxu0 %v3080_v4  ;;  %v2693_v4 = vld [vmem:[%s3623_s2 + $0x2d0] ss:$12 sps:$4 sm:$0xff]  }
  0x63   :  { %1541 = vmatpush1.bf16.msra.mxu0 %v2639_v37 }
  0x64   :  { %1542 = vmatprep.subr.bf16.mxu0 %v2647_v38  ;;  %1516 = vmatpush2.bf16.msra.mxu1 %v2690_v39  ;;  %v2740_v39 = vld [vmem:[%s3623_s2 + $0x158] ss:$12 sps:$4 sm:$0xff]  }
  0x65   :  { %1517 = vmatprep.subr.bf16.mxu1 %v2698_v40  ;;  %v2743_v40 = vld [vmem:[%s3623_s2 + $0x394] ss:$12 sps:$4 sm:$0xff]  }
  0x67   :  { %1543 = vmatpush1.bf16.msra.mxu0 %v2645_v41  ;;  %v2741_v41 = vld [vmem:[%s3623_s2 + $0x390] ss:$12 sps:$4 sm:$0xff]  }
  0x68   :  { %1544 = vmatprep.subr.bf16.mxu0 %v2653_v42  ;;  %1518 = vmatpush2.bf16.msra.mxu1 %v2696_v43  ;;  %v2744_v42 = vld [vmem:[%s3623_s2 + $0x98] ss:$12 sps:$4 sm:$0xff]   ;;  %v2745_v43 = vld [vmem:[%s3623_s2 + $0x140] ss:$12 sps:$4 sm:$0xff]  }
  0x69   :  { %1519 = vmatprep.subr.bf16.mxu1 %v2704_v44  ;;  %v2748_v44 = vld [vmem:[%s3623_s2 + $0x37c] ss:$12 sps:$4 sm:$0xff]  }
  0x6b   :  { %1545 = vmatpush1.bf16.msra.mxu0 %v2651_v45  ;;  %v2831_v45 = vmov 0  }
  0x6c   :  { %1546 = vmatprep.subr.bf16.mxu0 %v2659_v46  ;;  %1520 = vmatpush2.bf16.msra.mxu1 %v2702_v47  ;;  %v2746_v46 = vld [vmem:[%s3623_s2 + $0x378] ss:$12 sps:$4 sm:$0xff]   ;;  %v2749_v47 = vld [vmem:[%s3623_s2 + $0x80] ss:$12 sps:$4 sm:$0xff]  }
  0x6d   :  { %1521 = vmatprep.subr.bf16.mxu1 %v2710_v48  ;;  %v2750_v48 = vld [vmem:[%s3623_s2 + $0x128] ss:$12 sps:$4 sm:$0xff]  }
  0x6f   :  { %1547 = vmatpush1.bf16.msra.mxu0 %v2657_v49  ;;  %v2753_v49 = vld [vmem:[%s3623_s2 + $0x364] ss:$12 sps:$4 sm:$0xff]  }
  0x70   :  { %1548 = vmatprep.subr.bf16.mxu0 %v2665_v50  ;;  %1522 = vmatpush2.bf16.msra.mxu1 %v2708_v51  ;;  %v2751_v50 = vld [vmem:[%s3623_s2 + $0x360] ss:$12 sps:$4 sm:$0xff]   ;;  %v2754_v51 = vld [vmem:[%s3623_s2 + $0x68] ss:$12 sps:$4 sm:$0xff]  }
  0x71   :  { %1523 = vmatprep.subr.bf16.mxu1 %v2716_v52  ;;  %v2755_v52 = vld [vmem:[%s3623_s2 + $0x110] ss:$12 sps:$4 sm:$0xff]  }
  0x73   :  { %1549 = vmatpush1.bf16.msra.mxu0 %v2663_v53  ;;  %v2758_v53 = vld [vmem:[%s3623_s2 + $0x34c] ss:$12 sps:$4 sm:$0xff]  }
  0x74   :  { %1550 = vmatprep.subr.bf16.mxu0 %v2671_v54  ;;  %1524 = vmatpush2.bf16.msra.mxu1 %v2714_v55  ;;  %v2756_v54 = vld [vmem:[%s3623_s2 + $0x348] ss:$12 sps:$4 sm:$0xff]   ;;  %v2759_v55 = vld [vmem:[%s3623_s2 + $0x50] ss:$12 sps:$4 sm:$0xff]  }
  0x75   :  { %1525 = vmatprep.subr.bf16.mxu1 %v2722_v56  ;;  %v2760_v56 = vld [vmem:[%s3623_s2 + $0xf8] ss:$12 sps:$4 sm:$0xff]  }
  0x77   :  { %1551 = vmatpush1.bf16.msra.mxu0 %v2669_v57  ;;  %v2763_v57 = vld [vmem:[%s3623_s2 + $0x334] ss:$12 sps:$4 sm:$0xff]  }
  0x78   :  { %1552 = vmatprep.subr.bf16.mxu0 %v2677_v58  ;;  %1526 = vmatpush2.bf16.msra.mxu1 %v2720_v59  ;;  %v2761_v58 = vld [vmem:[%s3623_s2 + $0x330] ss:$12 sps:$4 sm:$0xff]   ;;  %v2764_v59 = vld [vmem:[%s3623_s2 + $0x38] ss:$12 sps:$4 sm:$0xff]  }
  0x79   :  { %1527 = vmatprep.subr.bf16.mxu1 %v2728_v2 }
  0x7b   :  { %1553 = vmatpush1.bf16.msra.mxu0 %v2675_v60  ;;  %v2765_v60 = vld [vmem:[%s3623_s2 + $0xe0] ss:$12 sps:$4 sm:$0xff]  }
  0x7c   :  { %1554 = vmatprep.subr.bf16.mxu0 %v2683_v61  ;;  %1528 = vmatpush2.bf16.msra.mxu1 %v2726_v3  ;;  %v2768_v61 = vld [vmem:[%s3623_s2 + $0x31c] ss:$12 sps:$4 sm:$0xff]   ;;  %v2771_v3 = vld [vmem:[%s3623_s2 + $0x300] ss:$12 sps:$4 sm:$0xff]  }
  0x7d   :  { %1529 = vmatprep.subr.bf16.mxu1 %v2734_v6  ;;  %v2775_v6 = vld [vmem:[%s3623_s2 + $0x2f0] ss:$12 sps:$4 sm:$0xff]  }
  0x7f   :  { %1555 = vmatpush1.bf16.msra.mxu0 %v2681_v62  ;;  %v2766_v62 = vld [vmem:[%s3623_s2 + $0x318] ss:$12 sps:$4 sm:$0xff]  }
  0x80   :  { %1556 = vmatprep.subr.bf16.mxu0 %v2689_v63  ;;  %1530 = vmatpush2.bf16.msra.mxu1 %v2732_v7  ;;  %v2769_v63 = vld [vmem:[%s3623_s2 + $0x20] ss:$12 sps:$4 sm:$0xff]  }
  0x81   :  { %1581 = vmatprep.subr.bf16.mxu1 %v2738_v10  ;;  %v2776_v10 = vld [vmem:[%s3623_s2 + $0x3b0] ss:$12 sps:$4 sm:$0xff]  }
  0x83   :  { %1557 = vmatpush2.bf16.msra.mxu0 %v2687_v0  ;;  %v2770_v0 = vld [vmem:[%s3623_s2 + $0xc8] ss:$12 sps:$4 sm:$0xff]  }
  0x84   :  { %1558 = vmatprep.subr.bf16.mxu0 %v2695_v1  ;;  %v2773_v1 = vld [vmem:[%s3623_s2 + $0x304] ss:$12 sps:$4 sm:$0xff]  }
  0x87   :  { %1559 = vmatpush2.bf16.msra.mxu0 %v2693_v4  ;;  %v2774_v4 = vld [vmem:[%s3623_s2 + $0x8] ss:$12 sps:$4 sm:$0xff]  }
  0x88   :  { %1560 = vmatprep.subr.bf16.mxu0 %v2701_v5 }
  0x8b   :  { %1561 = vmatpush2.bf16.msra.mxu0 %v2699_v8 }
  0x8c   :  { %1562 = vmatprep.subr.bf16.mxu0 %v2707_v9 }
  0x8f   :  { %1563 = vmatpush2.bf16.msra.mxu0 %v2705_v11 }
  0x90   :  { %1564 = vmatprep.subr.bf16.mxu0 %v2713_v12  ;;  %v2832_v12 = vmov 0.0  }
  0x93   :  { %1565 = vmatpush2.bf16.msra.mxu0 %v2711_v13  ;;  %v2777_v13 = vld [vmem:[%s3623_s2 + $0x230] ss:$12 sps:$4 sm:$0xff]  }
  0x94   :  { %1566 = vmatprep.subr.bf16.mxu0 %v2719_v14 }
  0x97   :  { %1567 = vmatpush2.bf16.msra.mxu0 %v2717_v15  ;;  %v2778_v15 = vld [vmem:[%s3623_s2 + $0x2d8] ss:$12 sps:$4 sm:$0xff]  }
  0x98   :  { %1568 = vmatprep.subr.bf16.mxu0 %v2725_v16  ;;  %v2779_v16 = vld [vmem:[%s3623_s2 + $0x398] ss:$12 sps:$4 sm:$0xff]  }
  0x9b   :  { %1569 = vmatpush2.bf16.msra.mxu0 %v2723_v17  ;;  %v2780_v17 = vld [vmem:[%s3623_s2 + $0x218] ss:$12 sps:$4 sm:$0xff]  }
  0x9c   :  { %1570 = vmatprep.subr.bf16.mxu0 %v2731_v18  ;;  %v2781_v18 = vld [vmem:[%s3623_s2 + $0x2c0] ss:$12 sps:$4 sm:$0xff]  }
  0x9f   :  { %1571 = vmatpush2.bf16.msra.mxu0 %v2729_v19  ;;  %v2782_v19 = vld [vmem:[%s3623_s2 + $0x380] ss:$12 sps:$4 sm:$0xff]  }
  0xa0   :  { %2381 = vmatprep.subr.bf16.mxu0 %v2735_v20  ;;  %v2783_v20 = vld [vmem:[%s3623_s2 + $0x200] ss:$12 sps:$4 sm:$0xff]  }
 0x102   :  { %v584_v21 = vpop.f32.mrf.mxu0  ;;  %v625_v22 = vpop.f32.mrf.mxu1 }
 0x103   :  { %v674_v23 = vmax.f32 %v625_v22, 0.0  ;;  %v672_v24 = vmax.f32 %v584_v21, 0.0  ;;  %v2784_v21 = vld [vmem:[%s3623_s2 + $0x2a8] ss:$12 sps:$4 sm:$0xff]  }
 0x104   :  { %v586_v25 = vpop.f32.mrf.mxu0  ;;  %v627_v26 = vpop.f32.mrf.mxu1  ;;  %v2785_v22 = vld [vmem:[%s3623_s2 + $0x368] ss:$12 sps:$4 sm:$0xff]  }
 0x105   :  { %v673_v27 = vmax.f32 %v586_v25, 0.0  ;;  %v675_v28 = vmax.f32 %v627_v26, 0.0  ;;  %v3325_v29 = vpack.c.bf16 %v674_v23, %v674_v23  ;;  %v3335_v36 = vpack.c.bf16 %v672_v24, %v672_v24  ;;  %v2786_v23 = vld [vmem:[%s3623_s2 + $0x1e8] ss:$12 sps:$4 sm:$0xff]   ;;  %v2787_v24 = vld [vmem:[%s3623_s2 + $0x290] ss:$12 sps:$4 sm:$0xff]  }
 0x106   :  { %v588_v30 = vpop.f32.mrf.mxu0  ;;  %v629_v31 = vpop.f32.mrf.mxu1  ;;  %v2788_v25 = vld [vmem:[%s3623_s2 + $0x350] ss:$12 sps:$4 sm:$0xff]  }
 0x107   :  { %v678_v32 = vpack.c.bf16 %v673_v27, %v673_v27  ;;  %v3327_v33 = vpack.c.bf16 %v675_v28, %v675_v28  ;;  %v2789_v26 = vld [vmem:[%s3623_s2 + $0x1d0] ss:$12 sps:$4 sm:$0xff]   ;;  %v2790_v27 = vld [vmem:[%s3623_s2 + $0x278] ss:$12 sps:$4 sm:$0xff]   ;;  %v2793_v31 = vld [vmem:[%s3623_s2 + $0x260] ss:$12 sps:$4 sm:$0xff]  }
 0x108   :  { %v589_v37 = vpop.f32.mrf.mxu0  ;;  %v630_v38 = vpop.f32.mrf.mxu1  ;;  %v2791_v28 = vld [vmem:[%s3623_s2 + $0x338] ss:$12 sps:$4 sm:$0xff]  }
 0x109   :  { %1531 = vmatprep.mubr.bf16.mxu1 %v678_v32  ;;  %1572 = vmatprep.mubr.bf16.mxu0 %v3327_v33  ;;  %v2792_v30 = vld [vmem:[%s3623_s2 + $0x1b8] ss:$12 sps:$4 sm:$0xff]  }
 0x10a   :  { %1532 = vmatmul.mubr.bf16.vlgmr.msra.gmra.mxu1 %v3335_v36  ;;  %1573 = vmatmul.mubr.bf16.vlgmr.msra.gmra.mxu0 %v3325_v29  ;;  %v2799_v37 = vld [vmem:[%s3624_s4 + $0x78] sm:$0xff]  }
 0x10b   :  { %2382 = vmatpush3.bf16.msra.mxu0 %v2739_v35  ;;  %1582 = vmatpush1.bf16.msra.mxu1 %v2736_v34  ;;  %v2796_v34 = vld [vmem:[%s3623_s2 + $0x248] ss:$12 sps:$4 sm:$0xff]   ;;  %v2800_v38 = vld [vmem:[%s3624_s4 + $0x38] sm:$0xff]  }
 0x10c   :  { %1654 = vmatprep.mubr.bf16.mxu0 %v678_v32  ;;  %2383 = vmatprep.subr.bf16.mxu0 %v2740_v39  ;;  %v2794_v32 = vld [vmem:[%s3623_s2 + $0x320] ss:$12 sps:$4 sm:$0xff]   ;;  %v2797_v35 = vld [vmem:[%s3623_s2 + $0x308] ss:$12 sps:$4 sm:$0xff]  }
 0x10d   :  { %1583 = vmatprep.subr.bf16.mxu1 %v2743_v40  ;;  %1613 = vmatprep.mubr.bf16.mxu1 %v2831_v45  ;;  %v2801_v39 = vld [vmem:[%s3624_s4 + $0x70] sm:$0xff]   ;;  %v2803_v40 = vld [vmem:[%s3624_s4 + $0x68] sm:$0xff]   ;;  %v2808_v45 = vld [vmem:[%s3624_s4 + $0x18] sm:$0xff]  }
 0x10f   :  { %2384 = vmatpush3.bf16.msra.mxu0 %v2744_v42  ;;  %1584 = vmatpush1.bf16.msra.mxu1 %v2741_v41  ;;  %v2804_v41 = vld [vmem:[%s3624_s4 + $0x28] sm:$0xff]   ;;  %v2805_v42 = vld [vmem:[%s3624_s4 + $0x60] sm:$0xff]  }
 0x110   :  { %2385 = vmatprep.subr.bf16.mxu0 %v2745_v43  ;;  %1585 = vmatprep.subr.bf16.mxu1 %v2748_v44  ;;  %v2806_v43 = vld [vmem:[%s3624_s4 + $0x20] sm:$0xff]   ;;  %v2807_v44 = vld [vmem:[%s3624_s4 + $0x58] sm:$0xff]  }
 0x113   :  { %2386 = vmatpush3.bf16.msra.mxu0 %v2749_v47  ;;  %1586 = vmatpush1.bf16.msra.mxu1 %v2746_v46  ;;  %v2809_v46 = vld [vmem:[%s3624_s4 + $0x50] sm:$0xff]  }
 0x114   :  { %2387 = vmatprep.subr.bf16.mxu0 %v2750_v48  ;;  %1587 = vmatprep.subr.bf16.mxu1 %v2753_v49  ;;  %v2810_v47 = vld [vmem:[%s3624_s4 + $0x10] sm:$0xff]   ;;  %v2811_v48 = vld [vmem:[%s3624_s4 + $0x48] sm:$0xff]  }
 0x115   :  { %v2812_v49 = vld [vmem:[%s3624_s4 + $0x8] sm:$0xff]  }
 0x117   :  { %2388 = vmatpush3.bf16.msra.mxu0 %v2754_v51  ;;  %1588 = vmatpush1.bf16.msra.mxu1 %v2751_v50  ;;  %v2813_v50 = vld [vmem:[%s3624_s4 + $0x40] sm:$0xff]  }
 0x118   :  { %2389 = vmatprep.subr.bf16.mxu0 %v2755_v52  ;;  %1589 = vmatprep.subr.bf16.mxu1 %v2758_v53  ;;  %v2814_v51 = vld [vmem:[%s3624_s4] sm:$0xff]   ;;  %v2815_v52 = vld [vmem:[%s3624_s4 + $0x98] sm:$0xff]   ;;  %v2816_v53 = vld [vmem:[%s3624_s4 + $0x90] sm:$0xff]  }
 0x11b   :  { %2390 = vmatpush3.bf16.msra.mxu0 %v2759_v55  ;;  %1590 = vmatpush1.bf16.msra.mxu1 %v2756_v54  ;;  %v2817_v54 = vld [vmem:[%s3624_s4 + $0x88] sm:$0xff]   ;;  %v2818_v55 = vld [vmem:[%s3624_s4 + $0x80] sm:$0xff]  }
 0x11c   :  { %2391 = vmatprep.subr.bf16.mxu0 %v2760_v56  ;;  %1591 = vmatprep.subr.bf16.mxu1 %v2763_v57 }
 0x11f   :  { %2392 = vmatpush3.bf16.msra.mxu0 %v2764_v59  ;;  %1592 = vmatpush1.bf16.msra.mxu1 %v2761_v58 }
 0x120   :  { %2393 = vmatprep.subr.bf16.mxu0 %v2765_v60  ;;  %1593 = vmatprep.subr.bf16.mxu1 %v2768_v61 }
 0x122   :  { %v2375_v2 = vpop.f32.mrf.mxu0 }
 0x123   :  { %2394 = vmatpush3.bf16.msra.mxu0 %v2769_v63  ;;  %1594 = vmatpush1.bf16.msra.mxu1 %v2766_v62 }
 0x124   :  { %v2376_v5 = vpop.f32.mrf.mxu0  ;;  %2395 = vmatprep.subr.bf16.mxu0 %v2770_v0  ;;  %1595 = vmatprep.subr.bf16.mxu1 %v2773_v1  ;;  %v844_v0 = vlaneseq }
 0x125   :  { %v2377_v7 = vadd.f32 %v2376_v5, %v2375_v2 }
 0x126   :  { %v2378_v8 = vpop.f32.mrf.mxu0  ;;  %v845_v1 = vshrl.u32 %v844_v0, 7  ;;  %v2350_v0 = vld [vmem:[%s3628_s7] ss:$0 sm:$0xff] }
 0x127   :  { %v676_v9 = vmax.f32 %v2377_v7, 0.0  ;;  %2396 = vmatpush3.bf16.msra.mxu0 %v2774_v4  ;;  %1596 = vmatpush1.bf16.msra.mxu1 %v2771_v3  ;;  %v842_v3 = vld [vmem:[%s3625_s3] sm:$0x7] }
 0x128   :  { %v2379_v11 = vpop.f32.mrf.mxu0  ;;  %2470 = vmatprep.subr.bf16.mxu0 %v2832_v12  ;;  %2403 = vmatprep.subr.bf16.mxu1 %v2775_v6  ;;  %v846_v2 = vsub.s32 0, %v845_v1  ;;  %v850_v4 = vsub.s32 1, %v845_v1 }
 0x129   :  { %v681_v14 = vpack.c.bf16 %v676_v9, %v676_v9 }
 0x12a   :  { %1655 = vmatmul.mubr.bf16.vlgmr.msra.gmra.mxu0 %v3335_v36  ;;  %v2798_v36 = vld [vmem:[%s3623_s2 + $0x188] ss:$12 sps:$4 sm:$0xff]   ;;  %v847_v5 = vrot.slane %v842_v3, %v846_v2  ;;  %v851_v6 = vrot.slane %v842_v3, %v850_v4 }
 0x12b   :  { %2471 = vmatpush3.bf16.msra.mxu0 %v2776_v10  ;;  %1614 = vmatmul.mubr.bf16.vlgmr.msra.gmra.mxu1 %v681_v14 }
 0x12c   :  { %2404 = vmatpush3.bf16.msra.mxu1 %v2777_v13  ;;  %1694 = vmatprep.mubr.bf16.mxu1 %v3327_v33  ;;  %v2795_v33 = vld [vmem:[%s3623_s2 + $0x1a0] ss:$12 sps:$4 sm:$0xff]  }
 0x12d   :  { %2472 = vmatprep.subr.bf16.mxu0 %v2832_v12  ;;  %2405 = vmatprep.subr.bf16.mxu1 %v2778_v15 }
 0x12e   :  { %2486 = vmatprep.mubr.msk.bf16.mxu0 %vm2833_vm0, %v2832_v12 }
 0x12f   :  { %2473 = vmatpush3.bf16.msra.mxu0 %v2779_v16 }
 0x130   :  { %2406 = vmatpush3.bf16.msra.mxu1 %v2780_v17  ;;  %2474 = vmatprep.subr.bf16.mxu0 %v2832_v12 }
 0x131   :  { %2407 = vmatprep.subr.bf16.mxu1 %v2781_v18 }
 0x133   :  { %2475 = vmatpush3.bf16.msra.mxu0 %v2782_v19 }
 0x134   :  { %2408 = vmatpush3.bf16.msra.mxu1 %v2783_v20  ;;  %2476 = vmatprep.subr.bf16.mxu0 %v2832_v12 }
 0x135   :  { %2409 = vmatprep.subr.bf16.mxu1 %v2784_v21 }
 0x137   :  { %2477 = vmatpush3.bf16.msra.mxu0 %v2785_v22 }
 0x138   :  { %2410 = vmatpush3.bf16.msra.mxu1 %v2786_v23  ;;  %2478 = vmatprep.subr.bf16.mxu0 %v2832_v12 }
 0x139   :  { %2411 = vmatprep.subr.bf16.mxu1 %v2787_v24 }
 0x13b   :  { %2479 = vmatpush3.bf16.msra.mxu0 %v2788_v25 }
 0x13c   :  { %2412 = vmatpush3.bf16.msra.mxu1 %v2789_v26  ;;  %2480 = vmatprep.subr.bf16.mxu0 %v2832_v12  ;;  %v854_v26 = vsub.s32 2, %v845_v1 }
 0x13d   :  { %2413 = vmatprep.subr.bf16.mxu1 %v2790_v27 }
 0x13e   :  { %v855_v27 = vrot.slane %v842_v3, %v854_v26 }
 0x13f   :  { %2481 = vmatpush3.bf16.msra.mxu0 %v2791_v28 }
 0x140   :  { %2414 = vmatpush3.bf16.msra.mxu1 %v2792_v30  ;;  %2482 = vmatprep.subr.bf16.mxu0 %v2832_v12 }
 0x141   :  { %2415 = vmatprep.subr.bf16.mxu1 %v2793_v31 }
 0x143   :  { %2483 = vmatpush3.bf16.msra.mxu0 %v2794_v32 }
 0x144   :  { %2416 = vmatpush3.bf16.msra.mxu1 %v2795_v33  ;;  %2484 = vmatprep.subr.bf16.mxu0 %v2832_v12 }
 0x145   :  { %2417 = vmatprep.subr.bf16.mxu1 %v2796_v34 }
 0x147   :  { %2485 = vmatpush3.bf16.msra.mxu0 %v2797_v35 }
 0x148   :  { %2418 = vmatpush3.bf16.msra.mxu1 %v2798_v36  ;;  %2490 = vmatprep.subr.bf16.mxu0 %v2832_v12 }
 0x149   :  { %2434 = vmatprep.subr.bf16.mxu1 %v2799_v37 }
 0x14a   :  { %2487 = vmatmul.mubr.bf16.vlgmr.msra.gmra.mxu0 %v681_v14 }
 0x14b   :  { %1695 = vmatmul.mubr.bf16.vlgmr.msra.gmra.mxu1 %v3325_v29  ;;  %2498 = vmatprep.mubr.msk.bf16.mxu0 %vm2833_vm0, %v2832_v12  ;;  %v2802_v29 = vld [vmem:[%s3624_s4 + $0x30] sm:$0xff]  }
 0x14c   :  { %2435 = vmatpush3.bf16.msra.mxu1 %v2800_v38  ;;  %2491 = vmatpush3.bf16.msra.mxu0 %v2815_v52 }
 0x14d   :  { %2436 = vmatprep.subr.bf16.mxu1 %v2801_v39  ;;  %2492 = vmatprep.subr.bf16.mxu0 %v2832_v12 }
 0x150   :  { %2437 = vmatpush3.bf16.msra.mxu1 %v2802_v29  ;;  %2493 = vmatpush3.bf16.msra.mxu0 %v2816_v53 }
 0x151   :  { %2438 = vmatprep.subr.bf16.mxu1 %v2803_v40  ;;  %2494 = vmatprep.subr.bf16.mxu0 %v2832_v12 }
 0x154   :  { %2439 = vmatpush3.bf16.msra.mxu1 %v2804_v41  ;;  %2495 = vmatpush3.bf16.msra.mxu0 %v2817_v54 }
 0x155   :  { %2440 = vmatprep.subr.bf16.mxu1 %v2805_v42  ;;  %2496 = vmatprep.subr.bf16.mxu0 %v2832_v12 }
 0x158   :  { %2441 = vmatpush3.bf16.msra.mxu1 %v2806_v43  ;;  %2497 = vmatpush3.bf16.msra.mxu0 %v2818_v55  ;;  %v2819_v43 = vld [vmem:[%s3626_s6 + $0x38] sm:$0xff]  }
 0x159   :  { %2442 = vmatprep.subr.bf16.mxu1 %v2807_v44  ;;  %v2820_v44 = vld [vmem:[%s3626_s6 + $0x30] sm:$0xff]  }
 0x15c   :  { %2443 = vmatpush3.bf16.msra.mxu1 %v2808_v45  ;;  %v2821_v45 = vld [vmem:[%s3626_s6 + $0x28] sm:$0xff]  }
 0x15d   :  { %2444 = vmatprep.subr.bf16.mxu1 %v2809_v46  ;;  %v2822_v46 = vld [vmem:[%s3626_s6 + $0x20] sm:$0xff]  }
 0x160   :  { %2445 = vmatpush3.bf16.msra.mxu1 %v2810_v47  ;;  %v2823_v47 = vld [vmem:[%s3626_s6 + $0x18] sm:$0xff]  }
 0x161   :  { %2446 = vmatprep.subr.bf16.mxu1 %v2811_v48  ;;  %v2824_v48 = vld [vmem:[%s3626_s6 + $0x10] sm:$0xff]  }
 0x164   :  { %2447 = vmatpush3.bf16.msra.mxu1 %v2812_v49  ;;  %v2825_v49 = vld [vmem:[%s3626_s6 + $0x8] sm:$0xff]  }
 0x165   :  { %2448 = vmatprep.subr.bf16.mxu1 %v2813_v50  ;;  %v2826_v50 = vld [vmem:[%s3626_s6] sm:$0xff]  }
 0x168   :  { %2449 = vmatpush3.bf16.msra.mxu1 %v2814_v51 }
 0x169   :  { %2502 = vmatprep.subr.bf16.mxu1 %v2832_v12 }
 0x1ca   :  { %v1533_v56 = vpop.f32.mrf.mxu1  ;;  %v1574_v57 = vpop.f32.mrf.mxu0 }
 0x1cb   :  { %v1534_v7 = vadd.f32 %v1533_v56, %v847_v5  ;;  %v2328_v56 = vld [vmem:[%s3627_s5] ss:$0 sm:$0xff] }
 0x1cc   :  { %v1535_v58 = vpop.f32.mrf.mxu1  ;;  %v1576_v59 = vpop.f32.mrf.mxu0 }
 0x1cd   :  { %v1536_v8 = vadd.f32 %v1535_v58, %v851_v6  ;;  %v1575_v9 = vadd.f32 %v1574_v57, %v1534_v7 }
 0x1ce   :  { %v1537_v60 = vpop.f32.mrf.mxu1  ;;  %v1578_v61 = vpop.f32.mrf.mxu0 }
 0x1cf   :  { %v1577_v13 = vadd.f32 %v1576_v59, %v1536_v8 }
 0x1d0   :  { %v1538_v62 = vpop.f32.mrf.mxu1  ;;  %v1579_v63 = vpop.f32.mrf.mxu0 }
 0x1ea   :  { %v2397_v10 = vpop.f32.mrf.mxu0 }
 0x1eb   :  { %v1615_v11 = vpop.f32.mrf.mxu1 }
 0x1ec   :  { %v1616_v14 = vadd.f32 %v1615_v11, %v1575_v9  ;;  %v2398_v15 = vpop.f32.mrf.mxu0 }
 0x1ed   :  { %v1617_v16 = vpop.f32.mrf.mxu1  ;;  %v2399_v28 = vadd.f32 %v2398_v15, %v2397_v10 }
 0x1ee   :  { %v1618_v17 = vadd.f32 %v1617_v16, %v1577_v13  ;;  %v2400_v18 = vpop.f32.mrf.mxu0  ;;  %v1742_v19 = vmax.f32 %v1616_v14, 0.0 }
 0x1ef   :  { %v1619_v20 = vpop.f32.mrf.mxu1  ;;  %v1657_v34 = vadd.f32 %v2399_v28, %v855_v27 }
 0x1f0   :  { %v1743_v21 = vmax.f32 %v1618_v17, 0.0  ;;  %v2401_v22 = vpop.f32.mrf.mxu0  ;;  %v1745_v25 = vpack.c.bf16 %v1742_v19, %v1742_v19 }
 0x1f1   :  { %v1620_v23 = vpop.f32.mrf.mxu1 }
 0x1f2   :  { %v1746_v24 = vpack.c.bf16 %v1743_v21, %v1743_v21 }
 0x1f4   :  { %1951 = vmatprep.mubr.bf16.mxu1 %v1746_v24 }
 0x1f5   :  { %1952 = vmatmul.mubr.bf16.vlgmr.msra.gmra.mxu1 %v1745_v25 }
 0x1f6   :  { %2518 = vmatprep.mubr.msk.bf16.mxu1 %vm2833_vm0, %v2832_v12  ;;  %2503 = vmatpush3.bf16.msra.mxu1 %v2819_v43 }
 0x1f7   :  { %2504 = vmatprep.subr.bf16.mxu1 %v2832_v12 }
 0x1fa   :  { %2505 = vmatpush3.bf16.msra.mxu1 %v2820_v44 }
 0x1fb   :  { %2506 = vmatprep.subr.bf16.mxu1 %v2832_v12 }
 0x1fe   :  { %2507 = vmatpush3.bf16.msra.mxu1 %v2821_v45 }
 0x1ff   :  { %2508 = vmatprep.subr.bf16.mxu1 %v2832_v12 }
 0x202   :  { %2509 = vmatpush3.bf16.msra.mxu1 %v2822_v46 }
 0x203   :  { %2510 = vmatprep.subr.bf16.mxu1 %v2832_v12 }
 0x206   :  { %2511 = vmatpush3.bf16.msra.mxu1 %v2823_v47 }
 0x207   :  { %2512 = vmatprep.subr.bf16.mxu1 %v2832_v12 }
 0x20a   :  { %v1736_v30 = vpop.f32.mrf.mxu0  ;;  %2513 = vmatpush3.bf16.msra.mxu1 %v2824_v48 }
 0x20b   :  { %v2419_v31 = vpop.f32.mrf.mxu1  ;;  %2514 = vmatprep.subr.bf16.mxu1 %v2832_v12 }
 0x20c   :  { %v2488_v32 = vpop.f32.mrf.mxu0 }
 0x20d   :  { %v2420_v33 = vpop.f32.mrf.mxu1 }
 0x20e   :  { %v2421_v35 = vadd.f32 %v2420_v33, %v2419_v31  ;;  %v1739_v36 = vpop.f32.mrf.mxu0  ;;  %2515 = vmatpush3.bf16.msra.mxu1 %v2825_v49 }
 0x20f   :  { %v2422_v37 = vpop.f32.mrf.mxu1  ;;  %2516 = vmatprep.subr.bf16.mxu1 %v2832_v12 }
 0x210   :  { %v1697_v38 = vadd.f32 %v2421_v35, %v1657_v34  ;;  %v2489_v39 = vpop.f32.mrf.mxu0 }
 0x211   :  { %v2423_v29 = vpop.f32.mrf.mxu1 }
 0x212   :  { %v1737_v40 = vadd.f32 %v1736_v30, %v1697_v38  ;;  %2517 = vmatpush3.bf16.msra.mxu1 %v2826_v50 }
 0x214   :  { %v1744_v41 = vmax.f32 %v1737_v40, 0.0 }
 0x216   :  { %v1747_v42 = vpack.c.bf16 %v1744_v41, %v1744_v41 }
 0x218   :  { %2499 = vmatmul.mubr.msk.bf16.vlgmr.msra.gmra.mxu0 %vm1915_vm1, %v1747_v42 }
 0x2b5   :  { %v2450_v51 = vpop.f32.mrf.mxu1 }
 0x2b7   :  { %v2451_v52 = vpop.f32.mrf.mxu1 }
 0x2b8   :  { %v2452_v55 = vadd.f32 %v2451_v52, %v2450_v51 }
 0x2b9   :  { %v2453_v53 = vpop.f32.mrf.mxu1 }
 0x2ba   :  { %v1954_v57 = vadd.f32 %v2452_v55, %v2328_v56 }
 0x2bb   :  { %v2454_v54 = vpop.f32.mrf.mxu1 }
 0x2d8   :  { %v1993_v58 = vpop.f32.mrf.mxu0 }
 0x2d9   :  { %v1994_v59 = vadd.f32 %v1993_v58, %v1954_v57 }
 0x2da   :  { %v2500_v60 = vpop.f32.mrf.mxu0 }
 0x2db   :  { %v1999_v61 = vmax.f32 %v1994_v59, 0.0 }
 0x2dc   :  { %v1996_v12 = vpop.f32.mrf.mxu0 }
 0x2dd   :  { %v2000_v62 = vpack.c.bf16 %v1999_v61, %v1999_v61 }
 0x2de   :  { %v2501_v63 = vpop.f32.mrf.mxu0 }
 0x2df   :  { %2519 = vmatmul.mubr.bf16.vlgmr.msra.gmra.mxu1 %v2000_v62 }
 0x39f   :  { %v2106_v1 = vpop.f32.mrf.mxu1 }
 0x3a0   :  { %v2107_v2 = vadd.f32 %v2350_v0, %v2106_v1 }
 0x3a1   :  { %v2520_v3 = vpop.f32.mrf.mxu1 }
 0x3a2   :  { %2112 = vmax.xlane.f32.xlu0 %v2107_v2 }
 0x3a3   :  { %v2109_v4 = vpop.f32.mrf.mxu1 }
 0x3a5   :  { %v2521_v5 = vpop.f32.mrf.mxu1 }
 0x42b   :  { %v2113_v6 = vpop.xlane.xlu0 %2112 }
 0x42c   :  { %v2114_v7 = vsub.f32 %v2107_v2, %v2113_v6 }
 0x42e   :  { %v2115_v8 = vmul.f32 1.442695, %v2114_v7 }
 0x430   :  { %2827 = vpow2.f32 %v2115_v8 }
 0x43d   :  { %v2828_v9 = vpop.eup %2827 }
 0x43e   :  { %2117 = vadd.xlane.f32.xlu0 %v2828_v9 }
 0x4c7   :  { %v2118_v10 = vpop.xlane.xlu0 %2117 }
 0x4c8   :  { %2829 = vrcp.f32 %v2118_v10 }
 0x4d5   :  { %v2830_v11 = vpop.eup %2829 }
 0x4d6   :  { %v2120_v13 = vmul.f32 %v2830_v11, %v2828_v9 }
 0x4d8   :  { %2121 = vst [vmem:[%s3629_s8] sm:$0xff] %v2120_v13 }

</bundles_post_ra>
